<compile_context>
chip_gen: v7x
topology: tpu7x:2x2x1
jax: 0.10.0
libtpu: 0.0.40
codegen_flags: <defaults>
</compile_context>

<pallas_src>
import functools
import math

import jax
import jax.numpy as jnp
from jax.experimental import pallas as pl
from jax.experimental.pallas import tpu as pltpu

_BLOCK_BYTES_CAP = 8 * 1024 * 1024          # per-block cap (x2 double-buffered)
_VMEM_LIMIT_BYTES = 48 * 1024 * 1024        # comfortably below v7x 64 MiB physical


def _fill_rows_kernel(c_ref, out_ref):
    """Lane- and sublane-dense path.

    c_ref:   (B, L) template row in VMEM, L a multiple of 128.
    out_ref: (B, Rt, L) block, Rt a multiple of 8 (or the full dim).
    Every (sublane) row of the block is a copy of the template row, so the
    store is full (8,128) vregs with no lane shuffling.
    """
    c = c_ref[...]                                   # (B, L)
    b, l = c.shape
    rt = out_ref.shape[1]
    out_ref[...] = jnp.broadcast_to(c[:, None, :], (b, rt, l)).astype(out_ref.dtype)


def _fill_flat_kernel(c_ref, out_ref, *, reps):
    """Fallback path: flat 2-D output chunk.

    c_ref:   (B, Lc) template (Lc = lcm(n,128) for the ragged case, or n for
             the tiny single-block case).
    out_ref: (B, reps*Lc) flat chunk.  When Lc is a 128-multiple the collapse
             (B, reps, Lc) -> (B, reps*Lc) is a free relayout of full vregs.
    """
    c = c_ref[...]
    b, lc = c.shape
    tiled = jnp.broadcast_to(c[:, None, :], (b, reps, lc))
    out_ref[...] = tiled.reshape(b, reps * lc).astype(out_ref.dtype)


def _choose_rt(r_total, row_bytes):
    """Row-block size: multiple of 8, <= ~8 MiB per block, >= 2 chunks when
    there is enough work (so v7x's two TensorCores both get a share)."""
    if r_total <= 8:
        return r_total                              # full dim -> always legal
    max_rt = max(8, (_BLOCK_BYTES_CAP // max(row_bytes, 1)) // 8 * 8)
    half_rt = (((r_total + 1) // 2) + 7) // 8 * 8   # ~half the rows, 8-aligned
    return max(8, min(max_rt, half_rt))


def _choose_cols(flat_len, lane_base, b, itemsize):
    """Flat-axis chunk for the ragged fallback: multiple of lane_base
    (= lcm(n,128)), bounded bytes, >= 2 chunks when possible."""
    max_cols = max(lane_base,
                   (_BLOCK_BYTES_CAP // max(b * itemsize, 1)) // lane_base * lane_base)
    half_cols = ((((flat_len + 1) // 2) + lane_base - 1) // lane_base) * lane_base
    return max(lane_base, min(max_cols, half_cols))


def filling_forward(c, num_labels, img_size):
    """Pallas wrapper reproducing Filling.forward.

    c: (B, num_labels). Returns (B, num_labels, H, W).
    """
    H, W = img_size
    B, n = c.shape
    assert n == num_labels
    flat_len = n * H * W
    assert flat_len < 2**31, "flat row length must fit in int32 addressing"

    itemsize = jnp.dtype(c.dtype).itemsize
    L = n * 128 // math.gcd(n, 128)                 # lcm(num_labels, 128)
    compiler_params = pltpu.CompilerParams(
        dimension_semantics=("parallel",),
        vmem_limit_bytes=_VMEM_LIMIT_BYTES,
    )

    if flat_len % L == 0:
        # ---- Main path: 3-D (B, R, L) output, lane- and sublane-dense. ----
        r_total = flat_len // L
        c_tmpl = jnp.tile(c, (1, L // n))           # (B, L), a few KiB, done in XLA
        # TODO(synk): for extremely large B (B*8*L*itemsize > block cap), also
        # chunk the batch axis; not needed for typical label-map batch sizes.
        rt = _choose_rt(r_total, B * L * itemsize)
        num_chunks = pl.cdiv(r_total, rt)

        out3 = pl.pallas_call(
            _fill_rows_kernel,
            out_shape=jax.ShapeDtypeStruct((B, r_total, L), c.dtype),
            grid_spec=pltpu.PrefetchScalarGridSpec(
                num_scalar_prefetch=0,
                grid=(num_chunks,),
                # Template is tiny and its block index is constant -> DMA'd
                # once, stays resident across all grid steps.
                in_specs=[pl.BlockSpec((B, L), lambda i: (0, 0))],
                out_specs=pl.BlockSpec((B, rt, L), lambda i: (0, i, 0)),
            ),
            compiler_params=compiler_params,
            cost_estimate=pl.CostEstimate(
                flops=0, transcendentals=0,
                bytes_accessed=(B * flat_len + B * L) * itemsize),
        )(c_tmpl)
        # Same row-major bytes as torch's .view -> free reshape.
        return out3.reshape(B, n, H, W)

    if flat_len <= L:
        # ---- Tiny ragged case: one full-width block; layout cost negligible. ----
        flat = pl.pallas_call(
            functools.partial(_fill_flat_kernel, reps=H * W),
            out_shape=jax.ShapeDtypeStruct((B, flat_len), c.dtype),
            grid_spec=pltpu.PrefetchScalarGridSpec(
                num_scalar_prefetch=0,
                grid=(1,),
                in_specs=[pl.BlockSpec((B, n), lambda i: (0, 0))],
                out_specs=pl.BlockSpec((B, flat_len), lambda i: (0, i)),
            ),
            compiler_params=compiler_params,
            cost_estimate=pl.CostEstimate(
                flops=0, transcendentals=0,
                bytes_accessed=(B * flat_len + B * n) * itemsize),
        )(c)
        return flat.reshape(B, n, H, W)

    # ---- Ragged fallback: lcm(n,128) does not divide flat_len. Chunk the ----
    # ---- flat axis in 128-aligned multiples of the template width; the   ----
    # ---- last block is partial (Pallas masks the out-of-bounds tail).    ----
    # TODO(synk): this path still underfills sublanes when B < 8; a padded 3-D
    # layout would fix it but is not needed for typical (n, H, W) choices.
    c_tmpl = jnp.tile(c, (1, L // n))               # (B, L)
    blk_cols = _choose_cols(flat_len, L, B, itemsize)
    reps = blk_cols // L
    num_chunks = pl.cdiv(flat_len, blk_cols)

    flat = pl.pallas_call(
        functools.partial(_fill_flat_kernel, reps=reps),
        out_shape=jax.ShapeDtypeStruct((B, flat_len), c.dtype),
        grid_spec=pltpu.PrefetchScalarGridSpec(
            num_scalar_prefetch=0,
            grid=(num_chunks,),
            in_specs=[pl.BlockSpec((B, L), lambda i: (0, 0))],
            out_specs=pl.BlockSpec((B, blk_cols), lambda i: (0, i)),
        ),
        compiler_params=compiler_params,
        cost_estimate=pl.CostEstimate(
            flops=0, transcendentals=0,
            bytes_accessed=(B * flat_len + B * L) * itemsize),
    )(c_tmpl)
    return flat.reshape(B, n, H, W)


def filling_reference(c, num_labels, img_size):
    """Pure-JAX reference mirroring torch's repeat + view (fusable by XLA).
    Prefer this over the Pallas kernel whenever the consumer can fuse."""
    H, W = img_size
    return jnp.tile(c, (1, H * W)).reshape(-1, num_labels, H, W)


if __name__ == "__main__":
    num_labels = 4
    img_size = (16, 16)
    B = 2

    key = jax.random.PRNGKey(0)
    c = jax.random.normal(key, (B, num_labels), dtype=jnp.float32)

    out = filling_forward(c, num_labels, img_size)
    out = jax.block_until_ready(out)

    ref = filling_reference(c, num_labels, img_size)
    assert out.shape == (B, num_labels, *img_size)
    assert jnp.allclose(out, ref), "Pallas output does not match reference"

    print("KERNEL_OK")
</pallas_src>

<mosaic_0001>
module attributes {stable_mosaic.version = 11 : i64} {
  func.func @_fill_rows_kernel(%arg0: i32, %arg1: memref<2x128xf32, #tpu.memory_space<vmem>>, %arg2: memref<2x8x128xf32, #tpu.memory_space<vmem>>) attributes {dimension_semantics = [#tpu.dimension_semantics<parallel>], iteration_bounds = array<i64: 1>, scalar_prefetch = 0 : i64, scratch_operands = 0 : i64, tpu.core_type = #tpu.core_type<tc>, window_params = [{pipeline_mode = #tpu.pipeline_mode<synchronous>, transform_indices = @transform_0, window_bounds = array<i64: 2, 128>}, {transform_indices = @transform_1, window_bounds = array<i64: 2, 8, 128>}]} {
    %c0 = arith.constant 0 : index
    %c0_0 = arith.constant 0 : index
    %0 = vector.load %arg1[%c0, %c0_0] : memref<2x128xf32, #tpu.memory_space<vmem>>, vector<2x128xf32>
    %1 = vector.shape_cast %0 : vector<2x128xf32> to vector<2x1x128xf32>
    %2 = vector.shape_cast %1 : vector<2x1x128xf32> to vector<2x1x128xf32>
    %3 = vector.broadcast %2 : vector<2x1x128xf32> to vector<2x8x128xf32>
    %c0_1 = arith.constant 0 : index
    %c0_2 = arith.constant 0 : index
    %c0_3 = arith.constant 0 : index
    %4 = vector.load %arg2[%c0_1, %c0_2, %c0_3] : memref<2x8x128xf32, #tpu.memory_space<vmem>>, vector<2x8x128xf32>
    tpu.vector_store %arg2[%c0_1, %c0_2, %c0_3], %3 {strides = array<i32>} : memref<2x8x128xf32, #tpu.memory_space<vmem>>, vector<2x8x128xf32>,
    return
  }
  func.func @transform_0(%arg0: i32) -> (i32, i32) {
    %c0_i32 = arith.constant 0 : i32
    %c0_i32_0 = arith.constant 0 : i32
    %c0_i32_1 = arith.constant 0 : i32
    return %c0_i32, %c0_i32_0 : i32, i32
  }
  func.func @transform_1(%arg0: i32) -> (i32, i32, i32) {
    %c0_i32 = arith.constant 0 : i32
    %c0_i32_0 = arith.constant 0 : i32
    %c0_i32_1 = arith.constant 0 : i32
    return %c0_i32, %arg0, %c0_i32_0 : i32, i32, i32
  }
}

</mosaic_0001>

<bundles_post_ra>
// kernel: tpu_custom_call.1
= control target key start
LH: loop header
LB: loop body
LE: loop exit
PB: predicated region body
PF: predicated region fallthrough
CT: control target
= control target key end

     0   :  { %6 = vsyncpa [#allocation3], 0  ;;  %s167_s0 = inlined_call_operand.hbm [shape: f32[2,128], index: 0, kind: input, shape index: {}]   ;;  %s168_s1 = inlined_call_operand.hbm [shape: f32[2,8,128], index: 1, kind: output, shape index: {}]  }
   0x1   :  { %7 = vsyncpa [#allocation4], 0  ;;  %s128_s6 = smov [#allocation2]   ;;  %s80_s10 = scalar_lea.hbm %s167_s0, 32 }
   0x2   :  { %s14_s7 = sshll.u32 %s128_s6, 4  ;;  %p81_p0 = scmp.ne.s32.totalorder %s167_s0, %s80_s10  ;;  %s15_s7 = int_to_ptr.vmem [resolvable:$true] %s14_s7 }
   0x3   :  { %p84_p1 = scmp.lt.u32.totalorder %s80_s10, %s167_s0 }
   0x5   :  { %p86_p2 = pnand %p84_p1, %p81_p0 }
   0x7   :  { %89 = shalt.err (!%p86_p2)
}
   0x8   :  { %s90_s15 = scalar_lea.vmem %s15_s7, 32  ;;  %p95_p4 = scmp.lt.s32.totalorder %s15_s7, %s15_s7 }
   0x9   :  { %p91_p3 = scmp.ne.s32.totalorder %s15_s7, %s90_s15  ;;  %p96_p5 = scmp.lt.s32.totalorder %s90_s15, %s90_s15 }
   0xb   :  { %p97_p6 = por %p96_p5, %p95_p4 }
   0xd   :  { %p98_p7 = pnand %p97_p6, %p91_p3 }
   0xf   :  { %101 = shalt.err (!%p98_p7)
}
  0x10   :  { %17 = dma.hbm_to_vmem [thread:$0]  %s167_s0, 32, %s15_s7, [#allocation3]  }
  0x11   :  { %124 = dma.done.wait [#allocation3], 32  }
  0x12   :  { %125 = vsyncadd [#allocation3], 4294967264  ;;  %v34_v0 = vlaneseq  ;;  %v129_v1 = vmov 1966171168   ;;  %s130_s18 = smov [#allocation5]  }
  0x13   :  { %v32_v2 = vunpack.c.l.s4 %v129_v1  ;;  %v74_v7 = vld.sshfl [vmem:[#allocation2] sm:$0x11 pattern:$0x75316420]  ;;  %s62_s19 = sshll.u32 %s130_s18, 4  ;;  %s63_s19 = int_to_ptr.vmem [resolvable:$true] %s62_s19 }
  0x14   :  { %v35_v3 = vshrl.u32 %v34_v0, 7  ;;  %v30_v9 = vcombine.high %v74_v7, %v74_v7  ;;  %s102_s0 = scalar_lea.vmem %s63_s19, 256  ;;  %p107_p9 = scmp.lt.s32.totalorder %s63_s19, %s63_s19 }
  0x15   :  { %v33_v4 = vunpack.c.0.s8 %v32_v2  ;;  %p103_p8 = scmp.ne.s32.totalorder %s63_s19, %s102_s0  ;;  %p108_p10 = scmp.lt.s32.totalorder %s102_s0, %s102_s0 }
  0x16   :  { %v47_v6 = vsub.s32 0, %v35_v3 }
  0x17   :  { %v36_v5 = vsub.s32 %v33_v4, %v35_v3  ;;  %p109_p11 = por %p108_p10, %p107_p9 }
  0x19   :  { %v37_v8 = vrot.slane %v74_v7, %v36_v5  ;;  %v44_v11 = vrot.slane %v30_v9, %v36_v5  ;;  %p110_p12 = pnand %p109_p11, %p103_p8 }
  0x1b   :  { %v48_v10 = vrot.slane %v37_v8, %v47_v6  ;;  %v52_v12 = vrot.slane %v44_v11, %v47_v6 }
  0x1d   :  { %55 = vst [vmem:[#allocation5] sm:$0xff] %v48_v10  ;;  %56 = vst [vmem:[#allocation5 + $0x8] sm:$0xff] %v52_v12 }
  0x1e   :  { %113 = shalt.err (!%p110_p12)
}
  0x1f   :  { %s114_s22 = scalar_lea.hbm %s168_s1, 256 }
  0x20   :  { %p115_p13 = scmp.ne.s32.totalorder %s168_s1, %s114_s22  ;;  %p118_p0 = scmp.lt.u32.totalorder %s114_s22, %s168_s1 }
  0x22   :  { %p120_p1 = pnand %p118_p0, %p115_p13 }
  0x24   :  { %123 = shalt.err (!%p120_p1)
}
  0x25   :  { %s131_s27 = smov 128   ;;  %s132_s28 = smov 8  }
  0x26   :  { %68 = dma.vmem_to_hbm [thread:$0]  %s63_s19, 256, %s168_s1, [#allocation4], %s131_s27, %s131_s27, %s132_s28  }
  0x27   :  { %126 = dma.done.wait [#allocation4], 256  }
  0x28   :  { %127 = vsyncadd [#allocation4], 4294967040 }
  0x29   :  { %72 = vsyncpa [#allocation3], 1 }
  0x2a   :  { %73 = vsyncpa [#allocation4], 1 }

</bundles_post_ra>
